<compile_context>
chip_gen: v7x
topology: tpu7x:2x2x1
jax: 0.10.0
libtpu: 0.0.40
codegen_flags: <defaults>
</compile_context>

<pallas_src>
import functools

import numpy as np
import jax
import jax.numpy as jnp
from jax.experimental import pallas as pl
from jax.experimental.pallas import tpu as pltpu


# Row layout of the packed per-column constant block (shape (_CONST_ROWS, Hp)).
_ROW_SW_L, _ROW_SW_R, _ROW_SW_U, _ROW_SW_D, _ROW_BIAS, _ROW_INSCALE = range(6)
_CONST_ROWS = 8  # padded to the sublane granule


def _round_up(x, m):
    return ((x + m - 1) // m) * m


def _range_prop_stencil_kernel(u0_ref, x_ref, c_ref, out_ref, *,
                               layers: int, scalar: float, n_grid: int,
                               hp: int):
    """One batch slab runs the whole iteration loop VMEM-resident.

    u0_ref : (TB, Hp) initial hidden state block (may contain -1 sentinels)
    x_ref  : (TB, Hp) input block (D_input == hidden for this module)
    c_ref  : (8, Hp)  packed constants:
               rows 0-3: scalar * w * {left,right,up,down}-validity mask
               row 4   : bias, row 5: diag(a * inputWeight), rows 6-7: zero
    out_ref: (TB, Hp) final hidden state
    """
    u0 = u0_ref[...]
    # u_fix = u.clone(); u_fix[u_fix == -1] = 0   (exact sentinel compare)
    u_fix = jnp.where(u0 == -1.0, 0.0, u0)

    sw_l = c_ref[_ROW_SW_L:_ROW_SW_L + 1, :]
    sw_r = c_ref[_ROW_SW_R:_ROW_SW_R + 1, :]
    sw_u = c_ref[_ROW_SW_U:_ROW_SW_U + 1, :]
    sw_d = c_ref[_ROW_SW_D:_ROW_SW_D + 1, :]
    bias = c_ref[_ROW_BIAS:_ROW_BIAS + 1, :]
    in_scale = c_ref[_ROW_INSCALE:_ROW_INSCALE + 1, :]

    # Loop-invariant term with `scalar` folded in once:
    #   scalar * (u_fix + input * diag(a*inputWeight) + bias)
    base_s = (u_fix + x_ref[...] * in_scale + bias) * scalar

    # Static lane shifts for the 5-point neighbour gather on the row-major
    # flattened (n_grid, n_grid) grid.  pltpu.roll follows jnp.roll semantics
    # (out[p] = u[(p - shift) mod Hp]); all wrap-around / padded-lane pulls
    # are killed by the directional masks folded into sw_*.
    s_left = 1 % hp                 # out[p] = u[p-1]       (left neighbour)
    s_right = (hp - 1) % hp         # out[p] = u[p+1]       (right neighbour)
    s_up = n_grid % hp              # out[p] = u[p-n_grid]  (up neighbour)
    s_down = (hp - n_grid) % hp     # out[p] = u[p+n_grid]  (down neighbour)

    def layer(u):
        nb = (sw_l * pltpu.roll(u, s_left, 1)
              + sw_r * pltpu.roll(u, s_right, 1)
              + sw_u * pltpu.roll(u, s_up, 1)
              + sw_d * pltpu.roll(u, s_down, 1))
        return jnp.tanh(base_s + nb)

    u = u0
    if layers <= 16:
        for _ in range(layers):     # small fixed trip count: full unroll
            u = layer(u)
    else:
        u = jax.lax.fori_loop(0, layers, lambda _, uu: layer(uu), u, unroll=2)
    out_ref[...] = u
    # TODO(synk): an arbitrary (non 5-point-grid) weightMask would need the
    # dense u @ (w*mask)^T MXU path instead of the roll-based stencil.


def build_fixed_parameters(n_grid: int):
    """Deterministic parameters matching the module __init__ for a 2-D grid.

      weightMask : 4-neighbour adjacency           -> hiddenWeight
      diagMask   : identity                        -> inputWeight
      edgeMask   : nodes with 3 neighbours (w=0.34)
      cornerMask : nodes with 2 neighbours (w=0.5), default w=0.25
      a = 1, bias = -0.15
    """
    H = n_grid * n_grid
    idx = np.arange(H)
    row, col = idx // n_grid, idx % n_grid
    m_left = (col > 0).astype(np.float32)
    m_right = (col < n_grid - 1).astype(np.float32)
    m_up = (row > 0).astype(np.float32)
    m_down = (row < n_grid - 1).astype(np.float32)

    deg = m_left + m_right + m_up + m_down
    w = np.full((H,), 0.25, np.float32)
    w[deg == 3] = 0.34                      # edgeMask
    w[deg == 2] = 0.5                       # cornerMask
    a = np.ones((H,), np.float32)
    in_scale = a * 1.0                      # a * diag(inputWeight) (diagMask)
    bias = np.full((H,), -0.15, np.float32)

    # Dense W = w * adjacency for the independent reference check only.
    adj = np.zeros((H, H), np.float32)
    for p in range(H):
        i, j = divmod(p, n_grid)
        for di, dj in ((-1, 0), (1, 0), (0, -1), (0, 1)):
            ii, jj = i + di, j + dj
            if 0 <= ii < n_grid and 0 <= jj < n_grid:
                adj[p, ii * n_grid + jj] = 1.0
    W_dense = w[:, None] * adj

    return dict(H=H, w=w, bias=bias, in_scale=in_scale,
                m_left=m_left, m_right=m_right, m_up=m_up, m_down=m_down,
                W_dense=W_dense)


def _pack_constants(params, scalar: float, Hp: int):
    H = params["H"]
    c = np.zeros((_CONST_ROWS, Hp), np.float32)
    sw = np.float32(scalar) * params["w"]
    c[_ROW_SW_L, :H] = sw * params["m_left"]
    c[_ROW_SW_R, :H] = sw * params["m_right"]
    c[_ROW_SW_U, :H] = sw * params["m_up"]
    c[_ROW_SW_D, :H] = sw * params["m_down"]
    c[_ROW_BIAS, :H] = params["bias"]
    c[_ROW_INSCALE, :H] = params["in_scale"]
    return jnp.asarray(c)


def range_propagation_fixed_weights(initial_hidden, inp, params, *,
                                    layers: int, scalar: float = 20.0,
                                    n_grid: int, block_b: int = 512):
    B, H = initial_hidden.shape
    assert inp.shape == (B, H) and H == n_grid * n_grid

    # Lane-dense hidden dim: pad H up to a multiple of 128.  Padded lanes are
    # zero-scaled by the boundary masks and sliced off on return.
    Hp = _round_up(H, 128)

    # Batch tiling: sublane-aligned (8) tiles; once B is big enough, aim for
    # >= 2 grid steps so v7x's second TensorCore gets work.
    if B <= block_b:
        tb = _round_up((B + 1) // 2, 8) if B >= 16 else _round_up(B, 8)
    else:
        tb = block_b
    Bp = _round_up(B, tb)

    pad_b, pad_h = Bp - B, Hp - H
    u0 = jnp.pad(initial_hidden, ((0, pad_b), (0, pad_h)))
    x = jnp.pad(inp, ((0, pad_b), (0, pad_h)))
    consts = _pack_constants(params, scalar, Hp)
    grid = (Bp // tb,)

    # VMEM budget: double-buffered (tb, Hp) slabs for u0/x/out, the tiny
    # constant block, plus in-flight temporaries; cap below physical VMEM
    # with ~8 MiB headroom.
    slab = tb * Hp * 4
    est = 3 * 2 * slab + 2 * _CONST_ROWS * Hp * 4 + 8 * slab + (4 << 20)
    try:
        vmem_cap = pltpu.get_tpu_info().vmem_capacity_bytes
    except Exception:
        vmem_cap = 64 << 20  # conservative (v7x per-TC) fallback
    vmem_limit = int(min(max(est, 16 << 20), vmem_cap - (8 << 20)))

    kernel = functools.partial(_range_prop_stencil_kernel, layers=layers,
                               scalar=scalar, n_grid=n_grid, hp=Hp)
    out = pl.pallas_call(
        kernel,
        out_shape=jax.ShapeDtypeStruct((Bp, Hp), jnp.float32),
        grid_spec=pltpu.PrefetchScalarGridSpec(
            num_scalar_prefetch=0,
            grid=grid,
            in_specs=[
                pl.BlockSpec((tb, Hp), lambda b: (b, 0)),           # u0 slab
                pl.BlockSpec((tb, Hp), lambda b: (b, 0)),           # input slab
                pl.BlockSpec((_CONST_ROWS, Hp), lambda b: (0, 0)),  # constants
            ],
            out_specs=pl.BlockSpec((tb, Hp), lambda b: (b, 0)),
        ),
        compiler_params=pltpu.CompilerParams(
            dimension_semantics=("parallel",),
            vmem_limit_bytes=vmem_limit,
        ),
    )(u0, x, consts)
    return out[:B, :H]


def _reference_forward_f64(u0, x, W_dense, bias, in_scale, layers,
                           scalar=20.0):
    """Independent float64 numpy transcription of the PyTorch forward."""
    u0 = np.asarray(u0, np.float64)
    x = np.asarray(x, np.float64)
    W = np.asarray(W_dense, np.float64)
    bias = np.asarray(bias, np.float64)
    in_scale = np.asarray(in_scale, np.float64)
    u_fix = np.where(u0 == -1.0, 0.0, u0)
    u = u0.copy()
    for _ in range(layers):
        v = u_fix + u @ W.T + bias[None, :] + x * in_scale[None, :]
        u = np.tanh(v * scalar)
    return u


if __name__ == "__main__":
    n_grid = 4            # hidden = D_input = 16
    layers = 8
    B = 2
    scalar = 20.0

    params = build_fixed_parameters(n_grid)
    H = params["H"]

    key = jax.random.PRNGKey(0)
    k1, k2, k3 = jax.random.split(key, 3)
    initial_hidden = jax.random.uniform(k1, (B, H), jnp.float32, -1.0, 1.0)
    # Sprinkle in exact -1.0 sentinels (the module zeroes these for u_fix).
    sentinel = jax.random.bernoulli(k3, 0.3, (B, H))
    initial_hidden = jnp.where(sentinel, -1.0, initial_hidden)
    inp = jax.random.uniform(k2, (B, H), jnp.float32, 0.0, 1.0)

    out = range_propagation_fixed_weights(
        initial_hidden, inp, params, layers=layers, scalar=scalar,
        n_grid=n_grid)
    out = jax.block_until_ready(out)

    # Independent f64 reference of the literal PyTorch algebra.  Tolerance is
    # modest because tanh(20*x) near its zero crossings amplifies benign f32
    # reassociation; structural errors (wrong neighbour/mask/weight) would
    # show up as O(1) sign flips, far above this threshold.
    ref = _reference_forward_f64(initial_hidden, inp, params["W_dense"],
                                 params["bias"], params["in_scale"],
                                 layers, scalar)
    np.testing.assert_allclose(np.asarray(out, np.float64), ref,
                               rtol=1e-2, atol=1e-2)
    print("KERNEL_OK")
</pallas_src>

<mosaic_0001>
module attributes {stable_mosaic.version = 11 : i64} {
  func.func @_range_prop_stencil_kernel(%arg0: i32, %arg1: memref<8x128xf32, #tpu.memory_space<vmem>>, %arg2: memref<8x128xf32, #tpu.memory_space<vmem>>, %arg3: memref<8x128xf32, #tpu.memory_space<vmem>>, %arg4: memref<8x128xf32, #tpu.memory_space<vmem>>) attributes {dimension_semantics = [#tpu.dimension_semantics<parallel>], iteration_bounds = array<i64: 1>, scalar_prefetch = 0 : i64, scratch_operands = 0 : i64, tpu.core_type = #tpu.core_type<tc>, window_params = [{transform_indices = @transform_0, window_bounds = array<i64: 8, 128>}, {transform_indices = @transform_1, window_bounds = array<i64: 8, 128>}, {pipeline_mode = #tpu.pipeline_mode<synchronous>, transform_indices = @transform_2, window_bounds = array<i64: 8, 128>}, {transform_indices = @transform_3, window_bounds = array<i64: 8, 128>}]} {
    %c0 = arith.constant 0 : index
    %c0_0 = arith.constant 0 : index
    %0 = vector.load %arg1[%c0, %c0_0] : memref<8x128xf32, #tpu.memory_space<vmem>>, vector<8x128xf32>
    %cst = arith.constant -1.000000e+00 : f32
    %1 = vector.broadcast %cst : f32 to vector<8x128xf32>
    %2 = arith.cmpf oeq, %0, %1 : vector<8x128xf32>
    %cst_1 = arith.constant 0.000000e+00 : f32
    %3 = vector.broadcast %cst_1 : f32 to vector<8x128xf32>
    %4 = arith.select %2, %3, %0 : vector<8x128xi1>, vector<8x128xf32>
    %c0_2 = arith.constant 0 : index
    %c0_3 = arith.constant 0 : index
    %5 = vector.load %arg3[%c0_2, %c0_3] : memref<8x128xf32, #tpu.memory_space<vmem>>, vector<1x128xf32>
    %c1 = arith.constant 1 : index
    %c0_4 = arith.constant 0 : index
    %6 = vector.load %arg3[%c1, %c0_4] : memref<8x128xf32, #tpu.memory_space<vmem>>, vector<1x128xf32>
    %c2 = arith.constant 2 : index
    %c0_5 = arith.constant 0 : index
    %7 = vector.load %arg3[%c2, %c0_5] : memref<8x128xf32, #tpu.memory_space<vmem>>, vector<1x128xf32>
    %c3 = arith.constant 3 : index
    %c0_6 = arith.constant 0 : index
    %8 = vector.load %arg3[%c3, %c0_6] : memref<8x128xf32, #tpu.memory_space<vmem>>, vector<1x128xf32>
    %c4 = arith.constant 4 : index
    %c0_7 = arith.constant 0 : index
    %9 = vector.load %arg3[%c4, %c0_7] : memref<8x128xf32, #tpu.memory_space<vmem>>, vector<1x128xf32>
    %c5 = arith.constant 5 : index
    %c0_8 = arith.constant 0 : index
    %10 = vector.load %arg3[%c5, %c0_8] : memref<8x128xf32, #tpu.memory_space<vmem>>, vector<1x128xf32>
    %c0_9 = arith.constant 0 : index
    %c0_10 = arith.constant 0 : index
    %11 = vector.load %arg2[%c0_9, %c0_10] : memref<8x128xf32, #tpu.memory_space<vmem>>, vector<8x128xf32>
    %12 = vector.broadcast %10 : vector<1x128xf32> to vector<8x128xf32>
    %13 = arith.mulf %11, %12 : vector<8x128xf32>
    %14 = arith.addf %4, %13 : vector<8x128xf32>
    %15 = vector.broadcast %9 : vector<1x128xf32> to vector<8x128xf32>
    %16 = arith.addf %14, %15 : vector<8x128xf32>
    %cst_11 = arith.constant 2.000000e+01 : f32
    %17 = vector.broadcast %cst_11 : f32 to vector<8x128xf32>
    %18 = arith.mulf %16, %17 : vector<8x128xf32>
    %c1_i32 = arith.constant 1 : i32
    %19 = tpu.dynamic_rotate %0 by %c1_i32 dim 1 : vector<8x128xf32>, i32 -> vector<8x128xf32>
    %20 = vector.broadcast %5 : vector<1x128xf32> to vector<8x128xf32>
    %21 = arith.mulf %20, %19 : vector<8x128xf32>
    %c127_i32 = arith.constant 127 : i32
    %22 = tpu.dynamic_rotate %0 by %c127_i32 dim 1 : vector<8x128xf32>, i32 -> vector<8x128xf32>
    %23 = vector.broadcast %6 : vector<1x128xf32> to vector<8x128xf32>
    %24 = arith.mulf %23, %22 : vector<8x128xf32>
    %25 = arith.addf %21, %24 : vector<8x128xf32>
    %c4_i32 = arith.constant 4 : i32
    %26 = tpu.dynamic_rotate %0 by %c4_i32 dim 1 : vector<8x128xf32>, i32 -> vector<8x128xf32>
    %27 = vector.broadcast %7 : vector<1x128xf32> to vector<8x128xf32>
    %28 = arith.mulf %27, %26 : vector<8x128xf32>
    %29 = arith.addf %25, %28 : vector<8x128xf32>
    %c124_i32 = arith.constant 124 : i32
    %30 = tpu.dynamic_rotate %0 by %c124_i32 dim 1 : vector<8x128xf32>, i32 -> vector<8x128xf32>
    %31 = vector.broadcast %8 : vector<1x128xf32> to vector<8x128xf32>
    %32 = arith.mulf %31, %30 : vector<8x128xf32>
    %33 = arith.addf %29, %32 : vector<8x128xf32>
    %34 = arith.addf %18, %33 : vector<8x128xf32>
    %35 = math.tanh %34 : vector<8x128xf32>
    %c1_i32_12 = arith.constant 1 : i32
    %36 = tpu.dynamic_rotate %35 by %c1_i32_12 dim 1 : vector<8x128xf32>, i32 -> vector<8x128xf32>
    %37 = vector.broadcast %5 : vector<1x128xf32> to vector<8x128xf32>
    %38 = arith.mulf %37, %36 : vector<8x128xf32>
    %c127_i32_13 = arith.constant 127 : i32
    %39 = tpu.dynamic_rotate %35 by %c127_i32_13 dim 1 : vector<8x128xf32>, i32 -> vector<8x128xf32>
    %40 = vector.broadcast %6 : vector<1x128xf32> to vector<8x128xf32>
    %41 = arith.mulf %40, %39 : vector<8x128xf32>
    %42 = arith.addf %38, %41 : vector<8x128xf32>
    %c4_i32_14 = arith.constant 4 : i32
    %43 = tpu.dynamic_rotate %35 by %c4_i32_14 dim 1 : vector<8x128xf32>, i32 -> vector<8x128xf32>
    %44 = vector.broadcast %7 : vector<1x128xf32> to vector<8x128xf32>
    %45 = arith.mulf %44, %43 : vector<8x128xf32>
    %46 = arith.addf %42, %45 : vector<8x128xf32>
    %c124_i32_15 = arith.constant 124 : i32
    %47 = tpu.dynamic_rotate %35 by %c124_i32_15 dim 1 : vector<8x128xf32>, i32 -> vector<8x128xf32>
    %48 = vector.broadcast %8 : vector<1x128xf32> to vector<8x128xf32>
    %49 = arith.mulf %48, %47 : vector<8x128xf32>
    %50 = arith.addf %46, %49 : vector<8x128xf32>
    %51 = arith.addf %18, %50 : vector<8x128xf32>
    %52 = math.tanh %51 : vector<8x128xf32>
    %c1_i32_16 = arith.constant 1 : i32
    %53 = tpu.dynamic_rotate %52 by %c1_i32_16 dim 1 : vector<8x128xf32>, i32 -> vector<8x128xf32>
    %54 = vector.broadcast %5 : vector<1x128xf32> to vector<8x128xf32>
    %55 = arith.mulf %54, %53 : vector<8x128xf32>
    %c127_i32_17 = arith.constant 127 : i32
    %56 = tpu.dynamic_rotate %52 by %c127_i32_17 dim 1 : vector<8x128xf32>, i32 -> vector<8x128xf32>
    %57 = vector.broadcast %6 : vector<1x128xf32> to vector<8x128xf32>
    %58 = arith.mulf %57, %56 : vector<8x128xf32>
    %59 = arith.addf %55, %58 : vector<8x128xf32>
    %c4_i32_18 = arith.constant 4 : i32
    %60 = tpu.dynamic_rotate %52 by %c4_i32_18 dim 1 : vector<8x128xf32>, i32 -> vector<8x128xf32>
    %61 = vector.broadcast %7 : vector<1x128xf32> to vector<8x128xf32>
    %62 = arith.mulf %61, %60 : vector<8x128xf32>
    %63 = arith.addf %59, %62 : vector<8x128xf32>
    %c124_i32_19 = arith.constant 124 : i32
    %64 = tpu.dynamic_rotate %52 by %c124_i32_19 dim 1 : vector<8x128xf32>, i32 -> vector<8x128xf32>
    %65 = vector.broadcast %8 : vector<1x128xf32> to vector<8x128xf32>
    %66 = arith.mulf %65, %64 : vector<8x128xf32>
    %67 = arith.addf %63, %66 : vector<8x128xf32>
    %68 = arith.addf %18, %67 : vector<8x128xf32>
    %69 = math.tanh %68 : vector<8x128xf32>
    %c1_i32_20 = arith.constant 1 : i32
    %70 = tpu.dynamic_rotate %69 by %c1_i32_20 dim 1 : vector<8x128xf32>, i32 -> vector<8x128xf32>
    %71 = vector.broadcast %5 : vector<1x128xf32> to vector<8x128xf32>
    %72 = arith.mulf %71, %70 : vector<8x128xf32>
    %c127_i32_21 = arith.constant 127 : i32
    %73 = tpu.dynamic_rotate %69 by %c127_i32_21 dim 1 : vector<8x128xf32>, i32 -> vector<8x128xf32>
    %74 = vector.broadcast %6 : vector<1x128xf32> to vector<8x128xf32>
    %75 = arith.mulf %74, %73 : vector<8x128xf32>
    %76 = arith.addf %72, %75 : vector<8x128xf32>
    %c4_i32_22 = arith.constant 4 : i32
    %77 = tpu.dynamic_rotate %69 by %c4_i32_22 dim 1 : vector<8x128xf32>, i32 -> vector<8x128xf32>
    %78 = vector.broadcast %7 : vector<1x128xf32> to vector<8x128xf32>
    %79 = arith.mulf %78, %77 : vector<8x128xf32>
    %80 = arith.addf %76, %79 : vector<8x128xf32>
    %c124_i32_23 = arith.constant 124 : i32
    %81 = tpu.dynamic_rotate %69 by %c124_i32_23 dim 1 : vector<8x128xf32>, i32 -> vector<8x128xf32>
    %82 = vector.broadcast %8 : vector<1x128xf32> to vector<8x128xf32>
    %83 = arith.mulf %82, %81 : vector<8x128xf32>
    %84 = arith.addf %80, %83 : vector<8x128xf32>
    %85 = arith.addf %18, %84 : vector<8x128xf32>
    %86 = math.tanh %85 : vector<8x128xf32>
    %c1_i32_24 = arith.constant 1 : i32
    %87 = tpu.dynamic_rotate %86 by %c1_i32_24 dim 1 : vector<8x128xf32>, i32 -> vector<8x128xf32>
    %88 = vector.broadcast %5 : vector<1x128xf32> to vector<8x128xf32>
    %89 = arith.mulf %88, %87 : vector<8x128xf32>
    %c127_i32_25 = arith.constant 127 : i32
    %90 = tpu.dynamic_rotate %86 by %c127_i32_25 dim 1 : vector<8x128xf32>, i32 -> vector<8x128xf32>
    %91 = vector.broadcast %6 : vector<1x128xf32> to vector<8x128xf32>
    %92 = arith.mulf %91, %90 : vector<8x128xf32>
    %93 = arith.addf %89, %92 : vector<8x128xf32>
    %c4_i32_26 = arith.constant 4 : i32
    %94 = tpu.dynamic_rotate %86 by %c4_i32_26 dim 1 : vector<8x128xf32>, i32 -> vector<8x128xf32>
    %95 = vector.broadcast %7 : vector<1x128xf32> to vector<8x128xf32>
    %96 = arith.mulf %95, %94 : vector<8x128xf32>
    %97 = arith.addf %93, %96 : vector<8x128xf32>
    %c124_i32_27 = arith.constant 124 : i32
    %98 = tpu.dynamic_rotate %86 by %c124_i32_27 dim 1 : vector<8x128xf32>, i32 -> vector<8x128xf32>
    %99 = vector.broadcast %8 : vector<1x128xf32> to vector<8x128xf32>
    %100 = arith.mulf %99, %98 : vector<8x128xf32>
    %101 = arith.addf %97, %100 : vector<8x128xf32>
    %102 = arith.addf %18, %101 : vector<8x128xf32>
    %103 = math.tanh %102 : vector<8x128xf32>
    %c1_i32_28 = arith.constant 1 : i32
    %104 = tpu.dynamic_rotate %103 by %c1_i32_28 dim 1 : vector<8x128xf32>, i32 -> vector<8x128xf32>
    %105 = vector.broadcast %5 : vector<1x128xf32> to vector<8x128xf32>
    %106 = arith.mulf %105, %104 : vector<8x128xf32>
    %c127_i32_29 = arith.constant 127 : i32
    %107 = tpu.dynamic_rotate %103 by %c127_i32_29 dim 1 : vector<8x128xf32>, i32 -> vector<8x128xf32>
    %108 = vector.broadcast %6 : vector<1x128xf32> to vector<8x128xf32>
    %109 = arith.mulf %108, %107 : vector<8x128xf32>
    %110 = arith.addf %106, %109 : vector<8x128xf32>
    %c4_i32_30 = arith.constant 4 : i32
    %111 = tpu.dynamic_rotate %103 by %c4_i32_30 dim 1 : vector<8x128xf32>, i32 -> vector<8x128xf32>
    %112 = vector.broadcast %7 : vector<1x128xf32> to vector<8x128xf32>
    %113 = arith.mulf %112, %111 : vector<8x128xf32>
    %114 = arith.addf %110, %113 : vector<8x128xf32>
    %c124_i32_31 = arith.constant 124 : i32
    %115 = tpu.dynamic_rotate %103 by %c124_i32_31 dim 1 : vector<8x128xf32>, i32 -> vector<8x128xf32>
    %116 = vector.broadcast %8 : vector<1x128xf32> to vector<8x128xf32>
    %117 = arith.mulf %116, %115 : vector<8x128xf32>
    %118 = arith.addf %114, %117 : vector<8x128xf32>
    %119 = arith.addf %18, %118 : vector<8x128xf32>
    %120 = math.tanh %119 : vector<8x128xf32>
    %c1_i32_32 = arith.constant 1 : i32
    %121 = tpu.dynamic_rotate %120 by %c1_i32_32 dim 1 : vector<8x128xf32>, i32 -> vector<8x128xf32>
    %122 = vector.broadcast %5 : vector<1x128xf32> to vector<8x128xf32>
    %123 = arith.mulf %122, %121 : vector<8x128xf32>
    %c127_i32_33 = arith.constant 127 : i32
    %124 = tpu.dynamic_rotate %120 by %c127_i32_33 dim 1 : vector<8x128xf32>, i32 -> vector<8x128xf32>
    %125 = vector.broadcast %6 : vector<1x128xf32> to vector<8x128xf32>
    %126 = arith.mulf %125, %124 : vector<8x128xf32>
    %127 = arith.addf %123, %126 : vector<8x128xf32>
    %c4_i32_34 = arith.constant 4 : i32
    %128 = tpu.dynamic_rotate %120 by %c4_i32_34 dim 1 : vector<8x128xf32>, i32 -> vector<8x128xf32>
    %129 = vector.broadcast %7 : vector<1x128xf32> to vector<8x128xf32>
    %130 = arith.mulf %129, %128 : vector<8x128xf32>
    %131 = arith.addf %127, %130 : vector<8x128xf32>
    %c124_i32_35 = arith.constant 124 : i32
    %132 = tpu.dynamic_rotate %120 by %c124_i32_35 dim 1 : vector<8x128xf32>, i32 -> vector<8x128xf32>
    %133 = vector.broadcast %8 : vector<1x128xf32> to vector<8x128xf32>
    %134 = arith.mulf %133, %132 : vector<8x128xf32>
    %135 = arith.addf %131, %134 : vector<8x128xf32>
    %136 = arith.addf %18, %135 : vector<8x128xf32>
    %137 = math.tanh %136 : vector<8x128xf32>
    %c1_i32_36 = arith.constant 1 : i32
    %138 = tpu.dynamic_rotate %137 by %c1_i32_36 dim 1 : vector<8x128xf32>, i32 -> vector<8x128xf32>
    %139 = vector.broadcast %5 : vector<1x128xf32> to vector<8x128xf32>
    %140 = arith.mulf %139, %138 : vector<8x128xf32>
    %c127_i32_37 = arith.constant 127 : i32
    %141 = tpu.dynamic_rotate %137 by %c127_i32_37 dim 1 : vector<8x128xf32>, i32 -> vector<8x128xf32>
    %142 = vector.broadcast %6 : vector<1x128xf32> to vector<8x128xf32>
    %143 = arith.mulf %142, %141 : vector<8x128xf32>
    %144 = arith.addf %140, %143 : vector<8x128xf32>
    %c4_i32_38 = arith.constant 4 : i32
    %145 = tpu.dynamic_rotate %137 by %c4_i32_38 dim 1 : vector<8x128xf32>, i32 -> vector<8x128xf32>
    %146 = vector.broadcast %7 : vector<1x128xf32> to vector<8x128xf32>
    %147 = arith.mulf %146, %145 : vector<8x128xf32>
    %148 = arith.addf %144, %147 : vector<8x128xf32>
    %c124_i32_39 = arith.constant 124 : i32
    %149 = tpu.dynamic_rotate %137 by %c124_i32_39 dim 1 : vector<8x128xf32>, i32 -> vector<8x128xf32>
    %150 = vector.broadcast %8 : vector<1x128xf32> to vector<8x128xf32>
    %151 = arith.mulf %150, %149 : vector<8x128xf32>
    %152 = arith.addf %148, %151 : vector<8x128xf32>
    %153 = arith.addf %18, %152 : vector<8x128xf32>
    %154 = math.tanh %153 : vector<8x128xf32>
    %c0_40 = arith.constant 0 : index
    %c0_41 = arith.constant 0 : index
    %155 = vector.load %arg4[%c0_40, %c0_41] : memref<8x128xf32, #tpu.memory_space<vmem>>, vector<8x128xf32>
    tpu.vector_store %arg4[%c0_40, %c0_41], %154 {strides = array<i32>} : memref<8x128xf32, #tpu.memory_space<vmem>>, vector<8x128xf32>,
    return
  }
  func.func @transform_0(%arg0: i32) -> (i32, i32) {
    %c0_i32 = arith.constant 0 : i32
    %c0_i32_0 = arith.constant 0 : i32
    return %arg0, %c0_i32 : i32, i32
  }
  func.func @transform_1(%arg0: i32) -> (i32, i32) {
    %c0_i32 = arith.constant 0 : i32
    %c0_i32_0 = arith.constant 0 : i32
    return %arg0, %c0_i32 : i32, i32
  }
  func.func @transform_2(%arg0: i32) -> (i32, i32) {
    %c0_i32 = arith.constant 0 : i32
    %c0_i32_0 = arith.constant 0 : i32
    %c0_i32_1 = arith.constant 0 : i32
    return %c0_i32, %c0_i32_0 : i32, i32
  }
  func.func @transform_3(%arg0: i32) -> (i32, i32) {
    %c0_i32 = arith.constant 0 : i32
    %c0_i32_0 = arith.constant 0 : i32
    return %arg0, %c0_i32 : i32, i32
  }
}

</mosaic_0001>

<bundles_post_ra>
// kernel: tpu_custom_call.1
= control target key start
LH: loop header
LB: loop body
LE: loop exit
PB: predicated region body
PF: predicated region fallthrough
CT: control target
= control target key end

     0   :  { %8 = vsyncpa [#allocation3], 0  ;;  %s523_s0 = inlined_call_operand.hbm [shape: f32[8,128], index: 0, kind: input, shape index: {}]   ;;  %s524_s1 = inlined_call_operand.hbm [shape: f32[8,128], index: 1, kind: input, shape index: {}]   ;;  %s525_s2 = inlined_call_operand.hbm [shape: f32[8,128], index: 2, kind: input, shape index: {}]   ;;  %s526_s3 = inlined_call_operand.hbm [shape: f32[8,128], index: 3, kind: output, shape index: {}]  }
   0x1   :  { %9 = vsyncpa [#allocation6], 0 }
   0x2   :  { %10 = vsyncpa [#allocation4], 0  ;;  %s365_s12 = smov [#allocation5]   ;;  %s366_s14 = smov [#allocation2]  }
   0x3   :  { %s27_s13 = sshll.u32 %s365_s12, 4  ;;  %s17_s15 = sshll.u32 %s366_s14, 4  ;;  %s28_s13 = int_to_ptr.vmem [resolvable:$true] %s27_s13  ;;  %s18_s15 = int_to_ptr.vmem [resolvable:$true] %s17_s15 }
   0x4   :  { %s271_s18 = scalar_lea.hbm %s524_s1, 128 }
   0x5   :  { %p272_p0 = scmp.ne.s32.totalorder %s524_s1, %s271_s18  ;;  %p275_p1 = scmp.lt.u32.totalorder %s271_s18, %s524_s1 }
   0x7   :  { %p277_p2 = pnand %p275_p1, %p272_p0 }
   0x9   :  { %280 = shalt.err (!%p277_p2)
}
   0xa   :  { %s281_s23 = scalar_lea.vmem %s28_s13, 128  ;;  %p286_p4 = scmp.lt.s32.totalorder %s28_s13, %s28_s13 }
   0xb   :  { %p282_p3 = scmp.ne.s32.totalorder %s28_s13, %s281_s23  ;;  %p287_p5 = scmp.lt.s32.totalorder %s281_s23, %s281_s23 }
   0xd   :  { %p288_p6 = por %p287_p5, %p286_p4 }
   0xf   :  { %p289_p7 = pnand %p288_p6, %p282_p3 }
  0x11   :  { %292 = shalt.err (!%p289_p7)
}
  0x12   :  { %30 = dma.hbm_to_vmem [thread:$0]  %s524_s1, 128, %s28_s13, [#allocation6]  }
  0x13   :  { %s293_s28 = scalar_lea.hbm %s523_s0, 128 }
  0x14   :  { %p294_p8 = scmp.ne.s32.totalorder %s523_s0, %s293_s28  ;;  %p297_p9 = scmp.lt.u32.totalorder %s293_s28, %s523_s0 }
  0x16   :  { %p299_p10 = pnand %p297_p9, %p294_p8 }
  0x18   :  { %302 = shalt.err (!%p299_p10)
}
  0x19   :  { %s303_s6 = scalar_lea.vmem %s18_s15, 128  ;;  %p308_p12 = scmp.lt.s32.totalorder %s18_s15, %s18_s15 }
  0x1a   :  { %p304_p11 = scmp.ne.s32.totalorder %s18_s15, %s303_s6  ;;  %p309_p13 = scmp.lt.s32.totalorder %s303_s6, %s303_s6 }
  0x1c   :  { %p310_p0 = por %p309_p13, %p308_p12 }
  0x1e   :  { %p311_p1 = pnand %p310_p0, %p304_p11 }
  0x20   :  { %314 = shalt.err (!%p311_p1)
}
  0x21   :  { %20 = dma.hbm_to_vmem [thread:$0]  %s523_s0, 128, %s18_s15, [#allocation3]  }
  0x22   :  { %s367_s8 = smov [#allocation7]   ;;  %s315_s12 = scalar_lea.hbm %s525_s2, 128 }
  0x23   :  { %s37_s9 = sshll.u32 %s367_s8, 4  ;;  %p316_p2 = scmp.ne.s32.totalorder %s525_s2, %s315_s12  ;;  %s38_s9 = int_to_ptr.vmem [resolvable:$true] %s37_s9 }
  0x24   :  { %p319_p3 = scmp.lt.u32.totalorder %s315_s12, %s525_s2 }
  0x26   :  { %p321_p4 = pnand %p319_p3, %p316_p2 }
  0x28   :  { %324 = shalt.err (!%p321_p4)
}
  0x29   :  { %s325_s18 = scalar_lea.vmem %s38_s9, 128  ;;  %p330_p6 = scmp.lt.s32.totalorder %s38_s9, %s38_s9 }
  0x2a   :  { %p326_p5 = scmp.ne.s32.totalorder %s38_s9, %s325_s18  ;;  %p331_p7 = scmp.lt.s32.totalorder %s325_s18, %s325_s18 }
  0x2c   :  { %p332_p8 = por %p331_p7, %p330_p6 }
  0x2e   :  { %p333_p9 = pnand %p332_p8, %p326_p5 }
  0x30   :  { %336 = shalt.err (!%p333_p9)
}
  0x31   :  { %40 = dma.hbm_to_vmem [thread:$0]  %s525_s2, 128, %s38_s9, [#allocation6]  }
  0x32   :  { %359 = dma.done.wait [#allocation3], 128  }
  0x33   :  { %360 = vsyncadd [#allocation3], 4294967168 }
  0x34   :  { %361 = dma.done.wait [#allocation6], 256  }
  0x35   :  { %362 = vsyncadd [#allocation6], 4294967040  ;;  %v50_v0 = vld [vmem:[#allocation2] sm:$0xff]  ;;  %s368_s19 = smov 1   ;;  %s369_s20 = smov 4   ;;  %v59_v2 = vld [vmem:[#allocation5] sm:$0xff] }
  0x36   :  { %72 = vrot.lane.b32.xlu0 %v50_v0, %s368_s19  ;;  %87 = vrot.lane.b32.xlu1 %v50_v0, %s369_s20  ;;  %s370_s21 = smov 127   ;;  %s371_s22 = smov 124   ;;  %v241_v1 = vld [vmem:[#allocation7 + $0x5] ss:$0 sm:$0xff]  ;;  %vm51_vm0 = vcmp.eq.f32.partialorder %v50_v0, -1.0 }
  0x37   :  { %v64_v3 = vmul.f32 %v241_v1, %v59_v2  ;;  %v52_v4 = vsel %vm51_vm0, 0.0, %v50_v0  ;;  %v242_v8 = vld [vmem:[#allocation7 + $0x4] ss:$0 sm:$0xff]  ;;  %v433_v9 = vld [vmem:[#allocation7] ss:$0 sm:$0xff]  ;;  %s372_s2 = smov [#allocation8]  }
  0x38   :  { %v435_v10 = vld [vmem:[#allocation7 + $0x1] ss:$0 sm:$0xff]  ;;  %v437_v11 = vld [vmem:[#allocation7 + $0x2] ss:$0 sm:$0xff]  ;;  %v439_v13 = vld [vmem:[#allocation7 + $0x3] ss:$0 sm:$0xff] }
  0x39   :  { %v65_v7 = vadd.f32 %v64_v3, %v52_v4  ;;  %s231_s23 = sshll.u32 %s372_s2, 4  ;;  %s232_s23 = int_to_ptr.vmem [resolvable:$true] %s231_s23 }
  0x3a   :  { %79 = vrot.lane.b32.xlu0 %v50_v0, %s370_s21  ;;  %95 = vrot.lane.b32.xlu1 %v50_v0, %s371_s22  ;;  %s337_s24 = scalar_lea.vmem %s232_s23, 128  ;;  %p342_p11 = scmp.lt.s32.totalorder %s232_s23, %s232_s23 }
  0x3b   :  { %v70_v15 = vadd.f32 %v242_v8, %v65_v7  ;;  %p338_p10 = scmp.ne.s32.totalorder %s232_s23, %s337_s24  ;;  %p343_p12 = scmp.lt.s32.totalorder %s337_s24, %s337_s24 }
  0x3d   :  { %v445_v21 = vmul.f32 20.0, %v70_v15  ;;  %p344_p13 = por %p343_p12, %p342_p11 }
  0x3f   :  { %p345_p0 = pnand %p344_p13, %p338_p10 }
  0xa8   :  { %v73_v5 = vpop.permute.xlu0 %72  ;;  %v88_v6 = vpop.permute.xlu1 %87 }
  0xa9   :  { %v78_v16 = vmul.f32 %v433_v9, %v73_v5  ;;  %v93_v18 = vmul.f32 %v437_v11, %v88_v6 }
  0xac   :  { %v80_v12 = vpop.permute.xlu0 %79  ;;  %v96_v14 = vpop.permute.xlu1 %95 }
  0xad   :  { %v85_v17 = vmul.f32 %v435_v10, %v80_v12  ;;  %v101_v20 = vmul.f32 %v439_v13, %v96_v14 }
  0xaf   :  { %v86_v19 = vadd.f32 %v85_v17, %v78_v16 }
  0xb1   :  { %v94_v22 = vadd.f32 %v93_v18, %v86_v19 }
  0xb3   :  { %v102_v23 = vadd.f32 %v101_v20, %v94_v22 }
  0xb5   :  { %v103_v24 = vadd.f32 %v102_v23, %v445_v21 }
  0xb7   :  { %255 = vtanh.f32 %v103_v24 }
  0xc1   :  { %v256_v25 = vpop.eup %255 }
  0xc2   :  { %108 = vrot.lane.b32.xlu1 %v256_v25, %s370_s21  ;;  %105 = vrot.lane.b32.xlu0 %v256_v25, %s368_s19 }
  0xc6   :  { %116 = vrot.lane.b32.xlu1 %v256_v25, %s371_s22  ;;  %112 = vrot.lane.b32.xlu0 %v256_v25, %s369_s20 }
 0x134   :  { %v109_v26 = vpop.permute.xlu1 %108  ;;  %v106_v27 = vpop.permute.xlu0 %105 }
 0x135   :  { %v110_v28 = vmul.f32 %v435_v10, %v109_v26  ;;  %v107_v29 = vmul.f32 %v433_v9, %v106_v27 }
 0x137   :  { %v111_v32 = vadd.f32 %v110_v28, %v107_v29 }
 0x138   :  { %v117_v30 = vpop.permute.xlu1 %116  ;;  %v113_v31 = vpop.permute.xlu0 %112 }
 0x139   :  { %v114_v33 = vmul.f32 %v437_v11, %v113_v31  ;;  %v118_v34 = vmul.f32 %v439_v13, %v117_v30 }
 0x13b   :  { %v115_v35 = vadd.f32 %v114_v33, %v111_v32 }
 0x13d   :  { %v119_v36 = vadd.f32 %v118_v34, %v115_v35 }
 0x13f   :  { %v120_v37 = vadd.f32 %v119_v36, %v445_v21 }
 0x141   :  { %257 = vtanh.f32 %v120_v37 }
 0x14b   :  { %v258_v38 = vpop.eup %257 }
 0x14c   :  { %125 = vrot.lane.b32.xlu1 %v258_v38, %s370_s21  ;;  %122 = vrot.lane.b32.xlu0 %v258_v38, %s368_s19 }
 0x150   :  { %133 = vrot.lane.b32.xlu1 %v258_v38, %s371_s22  ;;  %129 = vrot.lane.b32.xlu0 %v258_v38, %s369_s20 }
 0x1be   :  { %v126_v39 = vpop.permute.xlu1 %125  ;;  %v123_v40 = vpop.permute.xlu0 %122 }
 0x1bf   :  { %v127_v41 = vmul.f32 %v435_v10, %v126_v39  ;;  %v124_v42 = vmul.f32 %v433_v9, %v123_v40 }
 0x1c1   :  { %v128_v45 = vadd.f32 %v127_v41, %v124_v42 }
 0x1c2   :  { %v134_v43 = vpop.permute.xlu1 %133  ;;  %v130_v44 = vpop.permute.xlu0 %129 }
 0x1c3   :  { %v131_v46 = vmul.f32 %v437_v11, %v130_v44  ;;  %v135_v47 = vmul.f32 %v439_v13, %v134_v43 }
 0x1c5   :  { %v132_v48 = vadd.f32 %v131_v46, %v128_v45 }
 0x1c7   :  { %v136_v49 = vadd.f32 %v135_v47, %v132_v48 }
 0x1c9   :  { %v137_v50 = vadd.f32 %v136_v49, %v445_v21 }
 0x1cb   :  { %259 = vtanh.f32 %v137_v50 }
 0x1d5   :  { %v260_v51 = vpop.eup %259 }
 0x1d6   :  { %142 = vrot.lane.b32.xlu1 %v260_v51, %s370_s21  ;;  %139 = vrot.lane.b32.xlu0 %v260_v51, %s368_s19 }
 0x1da   :  { %150 = vrot.lane.b32.xlu1 %v260_v51, %s371_s22  ;;  %146 = vrot.lane.b32.xlu0 %v260_v51, %s369_s20 }
 0x248   :  { %v143_v52 = vpop.permute.xlu1 %142  ;;  %v140_v53 = vpop.permute.xlu0 %139 }
 0x249   :  { %v144_v54 = vmul.f32 %v435_v10, %v143_v52  ;;  %v141_v55 = vmul.f32 %v433_v9, %v140_v53 }
 0x24b   :  { %v145_v58 = vadd.f32 %v144_v54, %v141_v55 }
 0x24c   :  { %v151_v56 = vpop.permute.xlu1 %150  ;;  %v147_v57 = vpop.permute.xlu0 %146 }
 0x24d   :  { %v148_v59 = vmul.f32 %v437_v11, %v147_v57  ;;  %v152_v60 = vmul.f32 %v439_v13, %v151_v56 }
 0x24f   :  { %v149_v61 = vadd.f32 %v148_v59, %v145_v58 }
 0x251   :  { %v153_v62 = vadd.f32 %v152_v60, %v149_v61 }
 0x253   :  { %v154_v63 = vadd.f32 %v153_v62, %v445_v21 }
 0x255   :  { %261 = vtanh.f32 %v154_v63 }
 0x25f   :  { %v262_v0 = vpop.eup %261 }
 0x260   :  { %159 = vrot.lane.b32.xlu1 %v262_v0, %s370_s21  ;;  %156 = vrot.lane.b32.xlu0 %v262_v0, %s368_s19 }
 0x264   :  { %167 = vrot.lane.b32.xlu1 %v262_v0, %s371_s22  ;;  %163 = vrot.lane.b32.xlu0 %v262_v0, %s369_s20 }
 0x2d2   :  { %v160_v1 = vpop.permute.xlu1 %159  ;;  %v157_v2 = vpop.permute.xlu0 %156 }
 0x2d3   :  { %v161_v3 = vmul.f32 %v435_v10, %v160_v1  ;;  %v158_v4 = vmul.f32 %v433_v9, %v157_v2 }
 0x2d5   :  { %v162_v7 = vadd.f32 %v161_v3, %v158_v4 }
 0x2d6   :  { %v168_v5 = vpop.permute.xlu1 %167  ;;  %v164_v6 = vpop.permute.xlu0 %163 }
 0x2d7   :  { %v165_v8 = vmul.f32 %v437_v11, %v164_v6  ;;  %v169_v12 = vmul.f32 %v439_v13, %v168_v5 }
 0x2d9   :  { %v166_v14 = vadd.f32 %v165_v8, %v162_v7 }
 0x2db   :  { %v170_v15 = vadd.f32 %v169_v12, %v166_v14 }
 0x2dd   :  { %v171_v16 = vadd.f32 %v170_v15, %v445_v21 }
 0x2df   :  { %263 = vtanh.f32 %v171_v16 }
 0x2e9   :  { %v264_v17 = vpop.eup %263 }
 0x2ea   :  { %176 = vrot.lane.b32.xlu1 %v264_v17, %s370_s21  ;;  %173 = vrot.lane.b32.xlu0 %v264_v17, %s368_s19 }
 0x2ee   :  { %184 = vrot.lane.b32.xlu1 %v264_v17, %s371_s22  ;;  %180 = vrot.lane.b32.xlu0 %v264_v17, %s369_s20 }
 0x35c   :  { %v177_v18 = vpop.permute.xlu1 %176  ;;  %v174_v19 = vpop.permute.xlu0 %173 }
 0x35d   :  { %v178_v20 = vmul.f32 %v435_v10, %v177_v18  ;;  %v175_v22 = vmul.f32 %v433_v9, %v174_v19 }
 0x35f   :  { %v179_v25 = vadd.f32 %v178_v20, %v175_v22 }
 0x360   :  { %v185_v23 = vpop.permute.xlu1 %184  ;;  %v181_v24 = vpop.permute.xlu0 %180 }
 0x361   :  { %v182_v26 = vmul.f32 %v437_v11, %v181_v24  ;;  %v186_v27 = vmul.f32 %v439_v13, %v185_v23 }
 0x363   :  { %v183_v28 = vadd.f32 %v182_v26, %v179_v25 }
 0x365   :  { %v187_v29 = vadd.f32 %v186_v27, %v183_v28 }
 0x367   :  { %v188_v30 = vadd.f32 %v187_v29, %v445_v21 }
 0x369   :  { %265 = vtanh.f32 %v188_v30 }
 0x373   :  { %v266_v31 = vpop.eup %265 }
 0x374   :  { %193 = vrot.lane.b32.xlu1 %v266_v31, %s370_s21  ;;  %190 = vrot.lane.b32.xlu0 %v266_v31, %s368_s19 }
 0x378   :  { %201 = vrot.lane.b32.xlu1 %v266_v31, %s371_s22  ;;  %197 = vrot.lane.b32.xlu0 %v266_v31, %s369_s20 }
 0x3e6   :  { %v194_v32 = vpop.permute.xlu1 %193  ;;  %v191_v33 = vpop.permute.xlu0 %190 }
 0x3e7   :  { %v195_v34 = vmul.f32 %v435_v10, %v194_v32  ;;  %v192_v35 = vmul.f32 %v433_v9, %v191_v33 }
 0x3e9   :  { %v196_v38 = vadd.f32 %v195_v34, %v192_v35 }
 0x3ea   :  { %v202_v36 = vpop.permute.xlu1 %201  ;;  %v198_v37 = vpop.permute.xlu0 %197 }
 0x3eb   :  { %v199_v39 = vmul.f32 %v437_v11, %v198_v37  ;;  %v203_v40 = vmul.f32 %v439_v13, %v202_v36 }
 0x3ed   :  { %v200_v41 = vadd.f32 %v199_v39, %v196_v38 }
 0x3ef   :  { %v204_v42 = vadd.f32 %v203_v40, %v200_v41 }
 0x3f1   :  { %v205_v43 = vadd.f32 %v204_v42, %v445_v21 }
 0x3f3   :  { %267 = vtanh.f32 %v205_v43 }
 0x3fd   :  { %v268_v44 = vpop.eup %267 }
 0x3fe   :  { %210 = vrot.lane.b32.xlu1 %v268_v44, %s370_s21  ;;  %207 = vrot.lane.b32.xlu0 %v268_v44, %s368_s19 }
 0x402   :  { %218 = vrot.lane.b32.xlu1 %v268_v44, %s371_s22  ;;  %214 = vrot.lane.b32.xlu0 %v268_v44, %s369_s20 }
 0x470   :  { %v211_v45 = vpop.permute.xlu1 %210  ;;  %v208_v46 = vpop.permute.xlu0 %207 }
 0x471   :  { %v212_v47 = vmul.f32 %v435_v10, %v211_v45  ;;  %v209_v48 = vmul.f32 %v433_v9, %v208_v46 }
 0x473   :  { %v213_v51 = vadd.f32 %v212_v47, %v209_v48 }
 0x474   :  { %v219_v49 = vpop.permute.xlu1 %218  ;;  %v215_v50 = vpop.permute.xlu0 %214 }
 0x475   :  { %v216_v52 = vmul.f32 %v437_v11, %v215_v50  ;;  %v220_v53 = vmul.f32 %v439_v13, %v219_v49 }
 0x477   :  { %v217_v54 = vadd.f32 %v216_v52, %v213_v51 }
 0x479   :  { %v221_v55 = vadd.f32 %v220_v53, %v217_v54 }
 0x47b   :  { %v222_v56 = vadd.f32 %v221_v55, %v445_v21 }
 0x47d   :  { %269 = vtanh.f32 %v222_v56 }
 0x487   :  { %v270_v57 = vpop.eup %269 }
 0x488   :  { %224 = vst [vmem:[#allocation8] sm:$0xff] %v270_v57 }
 0x489   :  { %348 = shalt.err (!%p345_p0)
}
 0x48a   :  { %s349_s27 = scalar_lea.hbm %s526_s3, 128 }
 0x48b   :  { %p350_p1 = scmp.ne.s32.totalorder %s526_s3, %s349_s27  ;;  %p353_p2 = scmp.lt.u32.totalorder %s349_s27, %s526_s3 }
 0x48d   :  { %p355_p3 = pnand %p353_p2, %p350_p1 }
 0x48f   :  { %358 = shalt.err (!%p355_p3)
}
 0x490   :  { %234 = dma.vmem_to_hbm [thread:$0]  %s232_s23, 128, %s526_s3, [#allocation4]  }
 0x491   :  { %363 = dma.done.wait [#allocation4], 128  }
 0x492   :  { %364 = vsyncadd [#allocation4], 4294967168 }
 0x493   :  { %238 = vsyncpa [#allocation3], 1 }
 0x494   :  { %239 = vsyncpa [#allocation6], 1 }
 0x495   :  { %240 = vsyncpa [#allocation4], 1 }

</bundles_post_ra>
